<compile_context>
chip_gen: v7x
topology: tpu7x:2x2x1
jax: 0.10.0
libtpu: 0.0.40
codegen_flags: <defaults>
</compile_context>

<pallas_src>
import functools

import numpy as np
import jax
import jax.numpy as jnp
from jax.experimental import pallas as pl
from jax.experimental.pallas import tpu as pltpu


def _round_up(n, m):
    return ((n + m - 1) // m) * m


def _cdiv(a, b):
    return (a + b - 1) // b


def _tpu_generation():
    """Best-effort TPU generation probe; unknown -> conservative defaults."""
    try:
        kind = jax.devices()[0].device_kind.lower()
    except Exception:
        return "unknown"
    if "v7" in kind or "7x" in kind:
        return "v7"
    if "v6" in kind or "v5" in kind or "v4" in kind:
        return "pre_v7"
    return "unknown"


def _lane_padded_row_bytes(minor, itemsize):
    # Bytes per row of a (rows, minor) VMEM buffer: the minor (lane) dim is
    # padded to a multiple of 128 by the native (8,128) tiling.
    return _round_up(max(int(minor), 1), 128) * itemsize


def _vmem_bytes_per_row(order, hidden, classes, x_isz, out_isz, comp_isz,
                        transposed_out):
    """Conservative per-row-of-tile VMEM estimate (pipeline blocks + temps)."""
    per_row = 2 * _lane_padded_row_bytes(order, x_isz)            # x block (TM, ORDER), 2-deep
    if transposed_out:
        per_row += 2 * _round_up(classes, 8) * out_isz            # out block (C, TM), 2-deep
    else:
        per_row += 2 * _lane_padded_row_bytes(classes, out_isz)   # out block (TM, C), 2-deep
    # In-kernel temporaries: x^T (input dtype + compute cast), h (f32 + cast),
    # o (f32), and -- natural layout only -- the transposed o before the store.
    per_row += order * (x_isz + comp_isz)
    per_row += hidden * (4 + comp_isz)
    per_row += _round_up(classes, 8) * 4
    if not transposed_out:
        per_row += _lane_padded_row_bytes(classes, out_isz)
    return per_row


def _choose_tile_rows(rows, per_row_bytes, vmem_budget_bytes, target_steps=4):
    """Largest 128-multiple tile fitting the VMEM budget with >= target_steps steps."""
    cap = max(128, (vmem_budget_bytes // per_row_bytes) // 128 * 128)
    want = _round_up(_cdiv(rows, target_steps), 128)
    return max(128, min(want, cap, _round_up(rows, 128)))


def _mlp_kernel(x_ref, w1_ref, b1_ref, w2_ref, b2_ref, o_ref, *,
                compute_dtype, transposed_out):
    # x_ref : (TM, ORDER) natural-layout activation tile (input dtype).
    # w1_ref: (H, ORDER)  fc1 weight, native PyTorch (out, in) layout.
    # b1_ref: (H, 1)      fc1 bias (f32).
    # w2_ref: (C, H)      fc2 weight, native PyTorch (out, in) layout.
    # b2_ref: (C, 1)      fc2 bias (f32).
    # o_ref : (C, TM) if transposed_out else (TM, C).
    xt = x_ref[...].T.astype(compute_dtype)                 # XLU relayout + VPU cast
    h = jnp.dot(w1_ref[...], xt,
                preferred_element_type=jnp.float32)          # (H, TM), f32 acc
    h = jnp.maximum(h + b1_ref[...], 0.0)                    # ReLU
    o = jnp.dot(w2_ref[...], h.astype(compute_dtype),
                preferred_element_type=jnp.float32)          # (C, TM), f32 acc
    o = o + b2_ref[...]
    if transposed_out:
        o_ref[...] = o.astype(o_ref.dtype)                   # lane-dense (C, TM) stores
    else:
        o_ref[...] = o.T.astype(o_ref.dtype)                 # natural (TM, C) stores


@functools.partial(jax.jit, static_argnames=(
    "tile_rows", "compute_dtype", "out_dtype", "transposed_output",
    "vmem_limit_bytes"))
def _forward_impl(x, w1, b1, w2, b2, *, tile_rows, compute_dtype, out_dtype,
                  transposed_output, vmem_limit_bytes):
    B, T, order = x.shape
    hidden = w1.shape[0]
    classes = w2.shape[0]
    rows = B * T

    x2d = x.reshape(rows, order)                      # metadata-only reshape
    w1c = w1.astype(compute_dtype)
    w2c = w2.astype(compute_dtype)
    b1c = b1.astype(jnp.float32).reshape(hidden, 1)
    b2c = b2.astype(jnp.float32).reshape(classes, 1)

    grid = (_cdiv(rows, tile_rows),)                  # uneven edge tile is clipped

    kernel = functools.partial(_mlp_kernel, compute_dtype=compute_dtype,
                               transposed_out=transposed_output)

    if transposed_output:
        out_shape = jax.ShapeDtypeStruct((classes, rows), out_dtype)
        out_spec = pl.BlockSpec((classes, tile_rows), lambda i: (0, i))
    else:
        out_shape = jax.ShapeDtypeStruct((rows, classes), out_dtype)
        out_spec = pl.BlockSpec((tile_rows, classes), lambda i: (i, 0))

    out_isz = np.dtype(out_dtype).itemsize
    comp_isz = np.dtype(compute_dtype).itemsize
    cost = pl.CostEstimate(
        flops=2 * rows * (order * hidden + hidden * classes),
        transcendentals=0,
        bytes_accessed=int(rows * (order * x.dtype.itemsize + classes * out_isz)
                           + (order * hidden + hidden * classes) * comp_isz
                           + (hidden + classes) * 4))

    out = pl.pallas_call(
        kernel,
        out_shape=out_shape,
        grid_spec=pltpu.PrefetchScalarGridSpec(
            num_scalar_prefetch=0,
            grid=grid,
            in_specs=[
                pl.BlockSpec((tile_rows, order), lambda i: (i, 0)),   # x row tile
                pl.BlockSpec((hidden, order), lambda i: (0, 0)),      # W1 (resident)
                pl.BlockSpec((hidden, 1), lambda i: (0, 0)),          # b1
                pl.BlockSpec((classes, hidden), lambda i: (0, 0)),    # W2 (resident)
                pl.BlockSpec((classes, 1), lambda i: (0, 0)),         # b2
            ],
            out_specs=out_spec),
        compiler_params=pltpu.CompilerParams(
            dimension_semantics=("parallel",),
            vmem_limit_bytes=vmem_limit_bytes),
        cost_estimate=cost,
    )(x2d, w1c, b1c, w2c, b2c)

    out2d = out.T if transposed_output else out       # host transpose only on v7x path
    return out2d.reshape(B, T, classes)


def bw_nspk_net_forward(x, w1, b1, w2, b2, *, tile_rows=None,
                        compute_dtype=jnp.float32, out_dtype=None,
                        transposed_output=None):
    """Forward pass of BWNspkNet: fc2(relu(fc1(x[:, t, :]))) for every timestep.

    Args:
      x:  (B, T, ORDER) input batch.
      w1: (H, ORDER)    fc1 weight (PyTorch layout: out x in).
      b1: (H,)          fc1 bias.
      w2: (C, H)        fc2 weight (PyTorch layout: out x in).
      b2: (C,)          fc2 bias.
      tile_rows: rows (= B*T entries) per grid step.  None (default) derives it
          from the problem size and a per-generation VMEM budget; when sweeping
          manually, ~12K-32K is the useful range once the (8,128) lane padding
          of the narrow (TM,32)/(TM,10) blocks is accounted for.
      compute_dtype: matmul input dtype.  float32 (default) matches the PyTorch
          reference; bfloat16 only saves MXU time (not the bottleneck here).
      out_dtype: output dtype (default x.dtype); jnp.bfloat16 halves the output
          write if downstream tolerates it.
      transposed_output: True -> kernel emits lane-dense (C, rows) (best on v7x,
          host transposes back); False -> natural (rows, C) directly from the
          kernel (best on v5e/v6e, no host pass).  None auto-detects.

    Returns:
      (B, T, C) outputs for every timestep.
    """
    B, T, order = x.shape
    hidden = w1.shape[0]
    classes = w2.shape[0]
    rows = B * T

    gen = _tpu_generation()
    if transposed_output is None:
        transposed_output = (gen == "v7")
    if out_dtype is None:
        out_dtype = x.dtype
    out_dtype = np.dtype(out_dtype)
    compute_dtype = np.dtype(compute_dtype)

    # Per-generation VMEM budget / scoped limit (v7x: 64 MiB per TC physical;
    # v5e/v6e: 128 MiB; unknown -> conservative v7x-safe numbers).
    if gen == "pre_v7":
        vmem_budget, vmem_limit = 64 << 20, 96 << 20
    else:
        vmem_budget, vmem_limit = 36 << 20, 48 << 20

    if tile_rows is None:
        per_row = _vmem_bytes_per_row(order, hidden, classes,
                                      np.dtype(x.dtype).itemsize,
                                      out_dtype.itemsize,
                                      compute_dtype.itemsize,
                                      bool(transposed_output))
        tile_rows = _choose_tile_rows(rows, per_row, vmem_budget)
    else:
        tile_rows = max(128, _round_up(int(tile_rows), 128))
        tile_rows = min(tile_rows, _round_up(rows, 128))

    return _forward_impl(x, w1, b1, w2, b2, tile_rows=int(tile_rows),
                         compute_dtype=compute_dtype, out_dtype=out_dtype,
                         transposed_output=bool(transposed_output),
                         vmem_limit_bytes=int(vmem_limit))


def _reference_forward(x, w1, b1, w2, b2):
    """Pure-JAX reference matching the PyTorch loop-over-time semantics."""
    h = jnp.maximum(jnp.einsum("bto,ho->bth", x, w1) + b1, 0.0)
    return jnp.einsum("bth,ch->btc", h, w2) + b2


if __name__ == "__main__":
    # Small shapes consistent with the module:
    #   BATCH_SIZE=2, SIGNAL_DURATION=8, ORDER=32, N_HDN_NEURONS=32, NUM_CLASSES=10
    B, T, ORDER, HDN, NUM_CLASSES = 2, 8, 32, 32, 10
    dtype = jnp.float32

    key = jax.random.PRNGKey(0)
    kx, kw1, kb1, kw2, kb2 = jax.random.split(key, 5)

    x = jax.random.normal(kx, (B, T, ORDER), dtype=dtype)

    # Deterministic parameter init (PyTorch Linear-style uniform bounds).
    bound1 = 1.0 / (ORDER ** 0.5)
    w1 = jax.random.uniform(kw1, (HDN, ORDER), dtype, -bound1, bound1)
    b1 = jax.random.uniform(kb1, (HDN,), dtype, -bound1, bound1)
    bound2 = 1.0 / (HDN ** 0.5)
    w2 = jax.random.uniform(kw2, (NUM_CLASSES, HDN), dtype, -bound2, bound2)
    b2 = jax.random.uniform(kb2, (NUM_CLASSES,), dtype, -bound2, bound2)

    ref = _reference_forward(x, w1, b1, w2, b2)

    # Default path (auto output layout for the local generation, f32 compute):
    out = jax.block_until_ready(bw_nspk_net_forward(x, w1, b1, w2, b2))
    assert out.shape == (B, T, NUM_CLASSES), out.shape
    assert jnp.allclose(out, ref, atol=1e-5, rtol=1e-5), "default path mismatch"

    # Exercise both output layouts explicitly (v5e/v6e natural, v7x lane-dense).
    out_nat = jax.block_until_ready(
        bw_nspk_net_forward(x, w1, b1, w2, b2, transposed_output=False))
    out_tr = jax.block_until_ready(
        bw_nspk_net_forward(x, w1, b1, w2, b2, transposed_output=True))
    assert jnp.allclose(out_nat, ref, atol=1e-5, rtol=1e-5), "natural-layout mismatch"
    assert jnp.allclose(out_tr, ref, atol=1e-5, rtol=1e-5), "transposed-layout mismatch"

    # Optional fast-matmul path: bf16 MXU inputs, f32 accumulation.
    out_bf16 = jax.block_until_ready(
        bw_nspk_net_forward(x, w1, b1, w2, b2, compute_dtype=jnp.bfloat16))
    assert jnp.allclose(out_bf16.astype(jnp.float32), ref, atol=3e-2, rtol=3e-2), \
        "bf16 kernel mismatch vs reference"

    print("KERNEL_OK")
</pallas_src>

<mosaic_0001>
module attributes {stable_mosaic.version = 11 : i64} {
  func.func @_mlp_kernel(%arg0: i32, %arg1: memref<128x32xf32, #tpu.memory_space<vmem>>, %arg2: memref<32x32xf32, #tpu.memory_space<vmem>>, %arg3: memref<32x1xf32, #tpu.memory_space<vmem>>, %arg4: memref<10x32xf32, #tpu.memory_space<vmem>>, %arg5: memref<10x1xf32, #tpu.memory_space<vmem>>, %arg6: memref<128x10xf32, #tpu.memory_space<vmem>>) attributes {dimension_semantics = [#tpu.dimension_semantics<parallel>], iteration_bounds = array<i64: 1>, scalar_prefetch = 0 : i64, scratch_operands = 0 : i64, tpu.core_type = #tpu.core_type<tc>, window_params = [{transform_indices = @transform_0, window_bounds = array<i64: 128, 32>}, {pipeline_mode = #tpu.pipeline_mode<synchronous>, transform_indices = @transform_1, window_bounds = array<i64: 32, 32>}, {pipeline_mode = #tpu.pipeline_mode<synchronous>, transform_indices = @transform_2, window_bounds = array<i64: 32, 1>}, {pipeline_mode = #tpu.pipeline_mode<synchronous>, transform_indices = @transform_3, window_bounds = array<i64: 10, 32>}, {pipeline_mode = #tpu.pipeline_mode<synchronous>, transform_indices = @transform_4, window_bounds = array<i64: 10, 1>}, {transform_indices = @transform_5, window_bounds = array<i64: 128, 10>}]} {
    %c0 = arith.constant 0 : index
    %c0_0 = arith.constant 0 : index
    %0 = vector.load %arg1[%c0, %c0_0] : memref<128x32xf32, #tpu.memory_space<vmem>>, vector<128x32xf32>
    %1 = tpu.transpose %0, [1, 0] : vector<128x32xf32> -> vector<32x128xf32>
    %c0_1 = arith.constant 0 : index
    %c0_2 = arith.constant 0 : index
    %2 = vector.load %arg2[%c0_1, %c0_2] : memref<32x32xf32, #tpu.memory_space<vmem>>, vector<32x32xf32>
    %cst = arith.constant dense<0.000000e+00> : vector<32x128xf32>
    %3 = tpu.matmul %2, %1, %cst {dimension_numbers = #tpu.dot_dimension_numbers<[1], [0], [0], [1], [0, 0, 1, 1], [], []>} : vector<32x32xf32>, vector<32x128xf32>, vector<32x128xf32> -> vector<32x128xf32>
    %c0_3 = arith.constant 0 : index
    %c0_4 = arith.constant 0 : index
    %4 = vector.load %arg3[%c0_3, %c0_4] : memref<32x1xf32, #tpu.memory_space<vmem>>, vector<32x1xf32>
    %5 = vector.broadcast %4 : vector<32x1xf32> to vector<32x128xf32>
    %6 = arith.addf %3, %5 : vector<32x128xf32>
    %cst_5 = arith.constant 0.000000e+00 : f32
    %7 = vector.broadcast %cst_5 : f32 to vector<32x128xf32>
    %8 = arith.maximumf %6, %7 : vector<32x128xf32>
    %c0_6 = arith.constant 0 : index
    %c0_7 = arith.constant 0 : index
    %9 = vector.load %arg4[%c0_6, %c0_7] : memref<10x32xf32, #tpu.memory_space<vmem>>, vector<10x32xf32>
    %cst_8 = arith.constant dense<0.000000e+00> : vector<10x128xf32>
    %10 = tpu.matmul %9, %8, %cst_8 {dimension_numbers = #tpu.dot_dimension_numbers<[1], [0], [0], [1], [0, 0, 1, 1], [], []>} : vector<10x32xf32>, vector<32x128xf32>, vector<10x128xf32> -> vector<10x128xf32>
    %c0_9 = arith.constant 0 : index
    %c0_10 = arith.constant 0 : index
    %11 = vector.load %arg5[%c0_9, %c0_10] : memref<10x1xf32, #tpu.memory_space<vmem>>, vector<10x1xf32>
    %12 = vector.broadcast %11 : vector<10x1xf32> to vector<10x128xf32>
    %13 = arith.addf %10, %12 : vector<10x128xf32>
    %14 = tpu.transpose %13, [1, 0] : vector<10x128xf32> -> vector<128x10xf32>
    %c0_11 = arith.constant 0 : index
    %c0_12 = arith.constant 0 : index
    %15 = vector.load %arg6[%c0_11, %c0_12] : memref<128x10xf32, #tpu.memory_space<vmem>>, vector<128x10xf32>
    tpu.vector_store %arg6[%c0_11, %c0_12], %14 {strides = array<i32>} : memref<128x10xf32, #tpu.memory_space<vmem>>, vector<128x10xf32>,
    return
  }
  func.func @transform_0(%arg0: i32) -> (i32, i32) {
    %c0_i32 = arith.constant 0 : i32
    %c0_i32_0 = arith.constant 0 : i32
    return %arg0, %c0_i32 : i32, i32
  }
  func.func @transform_1(%arg0: i32) -> (i32, i32) {
    %c0_i32 = arith.constant 0 : i32
    %c0_i32_0 = arith.constant 0 : i32
    %c0_i32_1 = arith.constant 0 : i32
    return %c0_i32, %c0_i32_0 : i32, i32
  }
  func.func @transform_2(%arg0: i32) -> (i32, i32) {
    %c0_i32 = arith.constant 0 : i32
    %c0_i32_0 = arith.constant 0 : i32
    %c0_i32_1 = arith.constant 0 : i32
    return %c0_i32, %c0_i32_0 : i32, i32
  }
  func.func @transform_3(%arg0: i32) -> (i32, i32) {
    %c0_i32 = arith.constant 0 : i32
    %c0_i32_0 = arith.constant 0 : i32
    %c0_i32_1 = arith.constant 0 : i32
    return %c0_i32, %c0_i32_0 : i32, i32
  }
  func.func @transform_4(%arg0: i32) -> (i32, i32) {
    %c0_i32 = arith.constant 0 : i32
    %c0_i32_0 = arith.constant 0 : i32
    %c0_i32_1 = arith.constant 0 : i32
    return %c0_i32, %c0_i32_0 : i32, i32
  }
  func.func @transform_5(%arg0: i32) -> (i32, i32) {
    %c0_i32 = arith.constant 0 : i32
    %c0_i32_0 = arith.constant 0 : i32
    return %arg0, %c0_i32 : i32, i32
  }
}

</mosaic_0001>

<bundles_post_ra>
// kernel: _forward_impl.1
= control target key start
LH: loop header
LB: loop body
LE: loop exit
PB: predicated region body
PF: predicated region fallthrough
CT: control target
= control target key end

     0   :  { %10 = vsyncpa [#allocation3], 0  ;;  %vm65_vm0 = vcmask 261120   ;;  %v559_v6 = vmov 0   ;;  %vm342_vm2 = vcmask 80896   ;;  %s749_s0 = inlined_call_operand.vmem [shape: f32[16,32], index: 0, kind: input, shape index: {}]   ;;  %s750_s1 = inlined_call_operand.vmem [shape: f32[32,32], index: 1, kind: input, shape index: {}]   ;;  %s751_s2 = inlined_call_operand.vmem [shape: f32[32,1], index: 2, kind: input, shape index: {}]   ;;  %s752_s3 = inlined_call_operand.vmem [shape: f32[10,32], index: 3, kind: input, shape index: {}]   ;;  %s753_s4 = inlined_call_operand.vmem [shape: f32[10,1], index: 4, kind: input, shape index: {}]   ;;  %s754_s5 = inlined_call_operand.hbm [shape: f32[16,10], index: 5, kind: output, shape index: {}]  }
   0x1   :  { %v21_v0 = vld [vmem:[%s749_s0] sm:$0xff]  ;;  %v22_v1 = vld [vmem:[%s749_s0 + $0x8] sm:$0xff]  ;;  %vm601_vm1 = vmpackc.low %vm65_vm0, %vm65_vm0  ;;  %533 = vset.pattern.permute.xlu0 %v559_v6  ;;  %534 = vset.pattern.permute.xlu1 %v559_v6 }
   0x2   :  { %v472_v2 = vpack.c.bf16 %v22_v1, %v21_v0  ;;  %v23_v4 = vld [vmem:[%s749_s0 + $0x10] sm:$0xff]  ;;  %v24_v5 = vld [vmem:[%s749_s0 + $0x18] sm:$0xff]  ;;  %v25_v8 = vld [vmem:[%s749_s0 + $0x20] sm:$0xff] }
   0x3   :  { %v478_v7 = vpack.c.bf16 %v24_v5, %v23_v4  ;;  %v26_v9 = vld [vmem:[%s749_s0 + $0x28] sm:$0xff]  ;;  %v37_v10 = vld [vmem:[%s750_s1] sm:$0xff]  ;;  %v43_v12 = vld [vmem:[%s751_s2 + $0x10] sm:$0xff] }
   0x4   :  { %474 = vmatprep.subr.msk.bf16.mxu0 %vm601_vm1, %v472_v2  ;;  %455 = vmatprep.mubr.msk.f32.mxu0 %vm65_vm0, %v37_v10  ;;  %v41_v11 = vld [vmem:[%s751_s2] sm:$0xff]  ;;  %v484_v13 = vpack.c.bf16 %v26_v9, %v25_v8  ;;  %v42_v14 = vld [vmem:[%s751_s2 + $0x8] sm:$0xff]  ;;  %v44_v15 = vld [vmem:[%s751_s2 + $0x18] sm:$0xff] }
   0x5   :  { %477 = vmatpush3.bf16.xpose.msk.msra.mxu0 %vm601_vm1, %v472_v2  ;;  %47 = vperm.xlu0 %533, %v41_v11   ;;  %v217_v16 = vld [vmem:[%s753_s4] sm:$0xff]  ;;  %v27_v17 = vld [vmem:[%s749_s0 + $0x30] sm:$0xff]  ;;  %v28_v18 = vld [vmem:[%s749_s0 + $0x38] sm:$0xff] }
   0x6   :  { %480 = vmatprep.subr.msk.bf16.mxu0 %vm601_vm1, %v478_v7  ;;  %57 = vperm.xlu1 %534, %v43_v12   ;;  %v218_v19 = vld [vmem:[%s753_s4 + $0x8] sm:$0x3]  ;;  %v490_v20 = vpack.c.bf16 %v28_v18, %v27_v17  ;;  %v29_v21 = vld [vmem:[%s749_s0 + $0x40] sm:$0xff]  ;;  %v31_v24 = vld [vmem:[%s749_s0 + $0x50] sm:$0xff] }
   0x7   :  { %v30_v22 = vld [vmem:[%s749_s0 + $0x48] sm:$0xff]  ;;  %v32_v25 = vld [vmem:[%s749_s0 + $0x58] sm:$0xff]  ;;  %v33_v27 = vld [vmem:[%s749_s0 + $0x60] sm:$0xff] }
   0x8   :  { %v496_v23 = vpack.c.bf16 %v30_v22, %v29_v21  ;;  %v502_v26 = vpack.c.bf16 %v32_v25, %v31_v24  ;;  %v34_v28 = vld [vmem:[%s749_s0 + $0x68] sm:$0xff]  ;;  %v35_v30 = vld [vmem:[%s749_s0 + $0x70] sm:$0xff]  ;;  %v36_v31 = vld [vmem:[%s749_s0 + $0x78] sm:$0xff] }
   0x9   :  { %52 = vperm.xlu0 %533, %v42_v14   ;;  %v508_v29 = vpack.c.bf16 %v34_v28, %v33_v27  ;;  %v514_v32 = vpack.c.bf16 %v36_v31, %v35_v30  ;;  %v38_v33 = vld [vmem:[%s750_s1 + $0x8] sm:$0xff]  ;;  %v39_v34 = vld [vmem:[%s750_s1 + $0x10] sm:$0xff]  ;;  %v40_v35 = vld [vmem:[%s750_s1 + $0x18] sm:$0xff] }
   0xa   :  { %62 = vperm.xlu1 %534, %v44_v15   ;;  %v215_v36 = vld [vmem:[%s752_s3] sm:$0xff]  ;;  %v216_v55 = vld [vmem:[%s752_s3 + $0x8] sm:$0x3] }
   0xb   :  { %469 = vmatprep.mubr.msk.f32.mxu1 %vm65_vm0, %v215_v36 }
   0xd   :  { %483 = vmatpush3.bf16.xpose.msk.msra.mxu0 %vm601_vm1, %v478_v7  ;;  %221 = vperm.xlu0 %533, %v217_v16  }
   0xe   :  { %486 = vmatprep.subr.msk.bf16.mxu0 %vm601_vm1, %v484_v13  ;;  %226 = vperm.xlu1 %534, %v218_v19  }
  0x15   :  { %489 = vmatpush3.bf16.xpose.msk.msra.mxu0 %vm601_vm1, %v484_v13 }
  0x16   :  { %492 = vmatprep.subr.msk.bf16.mxu0 %vm601_vm1, %v490_v20 }
  0x1d   :  { %495 = vmatpush3.bf16.xpose.msk.msra.mxu0 %vm601_vm1, %v490_v20 }
  0x1e   :  { %498 = vmatprep.subr.msk.bf16.mxu0 %vm601_vm1, %v496_v23 }
  0x25   :  { %501 = vmatpush3.bf16.xpose.msk.msra.mxu0 %vm601_vm1, %v496_v23 }
  0x26   :  { %504 = vmatprep.subr.msk.bf16.mxu0 %vm601_vm1, %v502_v26 }
  0x2d   :  { %507 = vmatpush3.bf16.xpose.msk.msra.mxu0 %vm601_vm1, %v502_v26 }
  0x2e   :  { %510 = vmatprep.subr.msk.bf16.mxu0 %vm601_vm1, %v508_v29 }
  0x35   :  { %513 = vmatpush3.bf16.xpose.msk.msra.mxu0 %vm601_vm1, %v508_v29 }
  0x36   :  { %516 = vmatprep.subr.msk.bf16.mxu0 %vm601_vm1, %v514_v32 }
  0x3d   :  { %519 = vmatpush3.bf16.xpose.msk.msra.mxu0 %vm601_vm1, %v514_v32 }
  0x44   :  { %456 = vmatmul.mubr.msk.f32.vlgmr.msra.gmra.mrb[0].mxu0 %vm65_vm0, %v38_v33 }
  0x45   :  { %458 = vmatprep.mubr.msk.f32.mxu0 %vm65_vm0, %v39_v34 }
  0x48   :  { %459 = vmatmul.mubr.msk.f32.gmra.mrb[2].mxu0 %vm65_vm0, %v40_v35 }
  0x84   :  { %v48_v37 = vpop.permute.xlu0 %47 }
  0x85   :  { %v58_v38 = vpop.permute.xlu1 %57 }
  0x88   :  { %v53_v39 = vpop.permute.xlu0 %52 }
  0x89   :  { %v63_v45 = vpop.permute.xlu1 %62 }
  0x8c   :  { %v222_v57 = vpop.permute.xlu0 %221 }
  0x8d   :  { %v227_v60 = vpop.permute.xlu1 %226 }
 0x117   :  { %v457_v40 = vpop.f32.mrb[0].mxu0 }
 0x118   :  { %v198_v41 = vadd.f32 %v457_v40, %v53_v39  ;;  %v192_v42 = vpop.f32.mrb[1].mxu0 }
 0x119   :  { %v193_v43 = vadd.f32 %v192_v42, %v48_v37 }
 0x11a   :  { %v212_v44 = vmax.f32 %v198_v41, 0.0 }
 0x11b   :  { %v211_v46 = vmax.f32 %v193_v43, 0.0  ;;  %v460_v47 = vpop.f32.mrb[2].mxu0 }
 0x11c   :  { %v208_v48 = vadd.f32 %v460_v47, %v63_v45  ;;  %v202_v49 = vpop.f32.mrb[3].mxu0 }
 0x11d   :  { %v203_v50 = vadd.f32 %v202_v49, %v58_v38  ;;  %v520_v51 = vpack.c.bf16 %v212_v44, %v211_v46 }
 0x11e   :  { %v214_v52 = vmax.f32 %v208_v48, 0.0 }
 0x11f   :  { %v213_v53 = vmax.f32 %v203_v50, 0.0  ;;  %521 = vmatprep.subr.bf16.mxu1 %v520_v51 }
 0x120   :  { %523 = vmatpush3.bf16.msra.mxu1 %v520_v51 }
 0x121   :  { %v524_v54 = vpack.c.bf16 %v214_v52, %v213_v53 }
 0x123   :  { %525 = vmatprep.subr.bf16.mxu1 %v524_v54 }
 0x124   :  { %527 = vmatpush3.bf16.msra.mxu1 %v524_v54 }
 0x127   :  { %470 = vmatmul.mubr.msk.f32.vlgmr.msra.gmra.mrb[0].mxu1 %vm65_vm0, %v216_v55 }
 0x1fa   :  { %v471_v56 = vpop.f32.mrb[0].mxu1 }
 0x1fb   :  { %v301_v58 = vpop.f32.mrb[1].mxu1  ;;  %v307_v61 = vadd.f32 %v471_v56, %v227_v60 }
 0x1fc   :  { %v302_v59 = vadd.f32 %v301_v58, %v222_v57 }
 0x1fe   :  { %310 = vxpose.xlu0.b32.start [1/2] (short) %v302_v59, 128 }
 0x202   :  { %311 = vxpose.xlu0.b32.end [2/2] (short) %v307_v61, 128 }
 0x27e   :  { %v326_v62 = vpop.trf.xlu0 }
 0x27f   :  { %343 = vst.msk [vmem:[#allocation2] sm:$0xff] %vm342_vm2, %v326_v62 }
 0x282   :  { %v327_v63 = vpop.trf.xlu0 }
 0x283   :  { %344 = vst.msk [vmem:[#allocation2 + $0x8] sm:$0xff] %vm342_vm2, %v327_v63 }
 0x286   :  { %v328_v0 = vpop.trf.xlu0 }
 0x287   :  { %345 = vst.msk [vmem:[#allocation2 + $0x10] sm:$0xff] %vm342_vm2, %v328_v0 }
 0x28a   :  { %v329_v1 = vpop.trf.xlu0 }
 0x28b   :  { %346 = vst.msk [vmem:[#allocation2 + $0x18] sm:$0xff] %vm342_vm2, %v329_v1 }
 0x28e   :  { %v330_v2 = vpop.trf.xlu0 }
 0x28f   :  { %347 = vst.msk [vmem:[#allocation2 + $0x20] sm:$0xff] %vm342_vm2, %v330_v2 }
 0x292   :  { %v331_v3 = vpop.trf.xlu0 }
 0x293   :  { %348 = vst.msk [vmem:[#allocation2 + $0x28] sm:$0xff] %vm342_vm2, %v331_v3 }
 0x296   :  { %v332_v4 = vpop.trf.xlu0 }
 0x297   :  { %349 = vst.msk [vmem:[#allocation2 + $0x30] sm:$0xff] %vm342_vm2, %v332_v4 }
 0x29a   :  { %v333_v5 = vpop.trf.xlu0 }
 0x29b   :  { %350 = vst.msk [vmem:[#allocation2 + $0x38] sm:$0xff] %vm342_vm2, %v333_v5 }
 0x29e   :  { %v334_v6 = vpop.trf.xlu0 }
 0x29f   :  { %351 = vst.msk [vmem:[#allocation2 + $0x40] sm:$0xff] %vm342_vm2, %v334_v6 }
 0x2a2   :  { %v335_v7 = vpop.trf.xlu0 }
 0x2a3   :  { %352 = vst.msk [vmem:[#allocation2 + $0x48] sm:$0xff] %vm342_vm2, %v335_v7 }
 0x2a6   :  { %v336_v8 = vpop.trf.xlu0 }
 0x2a7   :  { %353 = vst.msk [vmem:[#allocation2 + $0x50] sm:$0xff] %vm342_vm2, %v336_v8 }
 0x2aa   :  { %v337_v9 = vpop.trf.xlu0 }
 0x2ab   :  { %354 = vst.msk [vmem:[#allocation2 + $0x58] sm:$0xff] %vm342_vm2, %v337_v9 }
 0x2ae   :  { %v338_v10 = vpop.trf.xlu0 }
 0x2af   :  { %355 = vst.msk [vmem:[#allocation2 + $0x60] sm:$0xff] %vm342_vm2, %v338_v10 }
 0x2b2   :  { %v339_v11 = vpop.trf.xlu0 }
 0x2b3   :  { %356 = vst.msk [vmem:[#allocation2 + $0x68] sm:$0xff] %vm342_vm2, %v339_v11 }
 0x2b6   :  { %v340_v12 = vpop.trf.xlu0 }
 0x2b7   :  { %357 = vst.msk [vmem:[#allocation2 + $0x70] sm:$0xff] %vm342_vm2, %v340_v12 }
 0x2ba   :  { %v341_v13 = vpop.trf.xlu0 }
 0x2bb   :  { %358 = vst.msk [vmem:[#allocation2 + $0x78] sm:$0xff] %vm342_vm2, %v341_v13 }
 0x2bc   :  { %363 = vsyncadd [#allocation3], 1792  ;;  %s560_s3 = smov [#allocation2]  }
 0x2bd   :  { %s364_s20 = sshll.u32 %s560_s3, 4  ;;  %s365_s20 = int_to_ptr.vmem [resolvable:$true] %s364_s20 }
 0x2be   :  { %s535_s2 = scalar_lea.vmem %s365_s20, 256  ;;  %s539_s21 = scalar_lea.vmem %s365_s20, 2048 }
 0x2bf   :  { %p536_p0 = scmp.ne.s32.totalorder %s365_s20, %s535_s2  ;;  %p540_p1 = scmp.lt.s32.totalorder %s365_s20, %s365_s20 }
 0x2c0   :  { %p541_p2 = scmp.lt.s32.totalorder %s539_s21, %s535_s2 }
 0x2c2   :  { %p542_p3 = por %p541_p2, %p540_p1 }
 0x2c4   :  { %p543_p4 = pnand %p542_p3, %p536_p0 }
 0x2c6   :  { %546 = shalt.err (!%p543_p4)
}
 0x2c7   :  { %s547_s24 = scalar_lea.hbm %s754_s5, 256 }
 0x2c8   :  { %p548_p5 = scmp.ne.s32.totalorder %s754_s5, %s547_s24  ;;  %p551_p6 = scmp.lt.u32.totalorder %s547_s24, %s754_s5 }
 0x2ca   :  { %p553_p7 = pnand %p551_p6, %p548_p5 }
 0x2cc   :  { %556 = shalt.err (!%p553_p7)
}
 0x2cd   :  { %s561_s28 = smov 128   ;;  %s562_s29 = smov 8  }
 0x2ce   :  { %370 = dma.vmem_to_hbm [thread:$0]  %s365_s20, 256, %s754_s5, [#allocation3], %s561_s28, %s561_s28, %s562_s29  }
 0x2cf   :  { %557 = dma.done.wait [#allocation3], 2048  }
 0x2d0   :  { %558 = vsyncadd [#allocation3], 4294965248 }
 0x2d1   :  { %374 = vsyncpa [#allocation3], 1 }

</bundles_post_ra>
